<compile_context>
chip_gen: v7x
topology: tpu7x:2x2x1
jax: 0.10.0
libtpu: 0.0.40
codegen_flags: <defaults>
</compile_context>

<pallas_src>
import functools

import jax
import jax.numpy as jnp
from jax.experimental import pallas as pl
from jax.experimental.pallas import tpu as pltpu


def _sigmoid(v):
    # exp -> EUP; approximate reciprocal -> EUP (free slot here).
    return pl.reciprocal(1.0 + jnp.exp(-v), approx=True)


def _se_kernel(x_ref, w1t_ref, b1_ref, w2t_ref, b2_ref, o_ref, *, inv_hw):
    """One batch block per grid step.

    x_ref  : (Bb, C, HW) VMEM  -- lane-dense activations
    w1t_ref: (C, Cr)     VMEM  -- conv_reduce 1x1 weight, transposed
    b1_ref : (1, Cr)     VMEM  -- conv_reduce bias (row)
    w2t_ref: (Cr, C)     VMEM  -- conv_expand 1x1 weight, transposed
    b2_ref : (1, C)      VMEM  -- conv_expand bias (row)
    o_ref  : (Bb, C, HW) VMEM
    """
    x = x_ref[...].astype(jnp.float32)                            # (Bb, C, HW)

    # ---- squeeze: global average pool = batched lane-axis reduction ----
    pooled = jnp.sum(x, axis=-1) * jnp.float32(inv_hw)            # (Bb, C)

    # ---- excite: the two 1x1 convs as batched MXU matmuls ----
    h = jnp.dot(pooled, w1t_ref[...],
                preferred_element_type=jnp.float32) + b1_ref[...]  # (Bb, Cr)
    h = h * _sigmoid(h)                                           # SiLU
    s = jnp.dot(h, w2t_ref[...],
                preferred_element_type=jnp.float32) + b2_ref[...]  # (Bb, C)
    scale = _sigmoid(s)                                           # (Bb, C)

    # ---- per-channel scaling: (Bb,C,1) lane-broadcast over (Bb,C,HW) ----
    o_ref[...] = (x * scale[:, :, None]).astype(o_ref.dtype)


def _pick_block_b(B, bytes_per_image, *, max_block_bytes=4 << 20):
    """Largest divisor of B whose x-block stays under ~4 MiB and (when
    possible) still leaves >= 2 grid steps so both v7x TensorCores get work."""
    if B <= 1:
        return 1
    cap = max(1, max_block_bytes // max(1, bytes_per_image))
    best_multi = 0   # best divisor that keeps >= 2 grid steps
    best_any = 1     # best divisor under the VMEM cap, regardless
    for d in range(1, B + 1):
        if B % d != 0 or d > cap:
            continue
        best_any = d
        if B // d >= 2:
            best_multi = d
    return best_multi if best_multi > 0 else best_any


def se_pallas(x, w_reduce, b_reduce, w_expand, b_expand, *, block_b=None):
    """SE forward.

    x        : (B, C, H, W)  with C == expand_c
    w_reduce : (Cr, C)   conv_reduce weight (squeezed from (Cr, C, 1, 1))
    b_reduce : (Cr,)     conv_reduce bias
    w_expand : (C, Cr)   conv_expand weight (squeezed from (C, Cr, 1, 1))
    b_expand : (C,)      conv_expand bias
    """
    B, C, H, W = x.shape
    Cr = w_reduce.shape[0]
    HW = H * W

    if block_b is None:
        block_b = _pick_block_b(B, C * HW * x.dtype.itemsize)
    assert B % block_b == 0, "block_b must divide B"

    # Lane-dense view: the last (lane) dim is H*W.
    x2 = x.reshape(B, C, HW)

    # Pre-transposed weights / row biases so the kernel needs no relayout.
    w1t = jnp.asarray(w_reduce, jnp.float32).T              # (C, Cr)
    b1 = jnp.asarray(b_reduce, jnp.float32).reshape(1, Cr)  # (1, Cr)
    w2t = jnp.asarray(w_expand, jnp.float32).T              # (Cr, C)
    b2 = jnp.asarray(b_expand, jnp.float32).reshape(1, C)   # (1, C)

    kernel = functools.partial(_se_kernel, inv_hw=1.0 / HW)

    out2 = pl.pallas_call(
        kernel,
        out_shape=jax.ShapeDtypeStruct((B, C, HW), x.dtype),
        grid_spec=pltpu.PrefetchScalarGridSpec(
            num_scalar_prefetch=0,
            grid=(B // block_b,),
            in_specs=[
                pl.BlockSpec((block_b, C, HW), lambda b: (b, 0, 0)),
                pl.BlockSpec((C, Cr), lambda b: (0, 0)),
                pl.BlockSpec((1, Cr), lambda b: (0, 0)),
                pl.BlockSpec((Cr, C), lambda b: (0, 0)),
                pl.BlockSpec((1, C), lambda b: (0, 0)),
            ],
            out_specs=pl.BlockSpec((block_b, C, HW), lambda b: (b, 0, 0)),
        ),
        compiler_params=pltpu.CompilerParams(
            dimension_semantics=("parallel",),
        ),
    )(x2, w1t, b1, w2t, b2)

    return out2.reshape(B, C, H, W)


def se_reference(x, w_reduce, b_reduce, w_expand, b_expand):
    """Pure-JAX reference mirroring the PyTorch SE forward."""
    pooled = jnp.mean(x, axis=(2, 3))                    # (B, C)
    h = pooled @ w_reduce.T + b_reduce                   # (B, Cr)
    h = h * jax.nn.sigmoid(h)                            # SiLU
    s = h @ w_expand.T + b_expand                        # (B, C)
    s = jax.nn.sigmoid(s)
    return x * s[:, :, None, None]


if __name__ == "__main__":
    # SE(input_c=32, expand_c=32, se_ratio=0.25) -> squeeze_c = 8
    B, H, W = 2, 16, 16
    input_c, expand_c, se_ratio = 32, 32, 0.25
    squeeze_c = int(input_c * se_ratio)

    key = jax.random.PRNGKey(0)
    kx, k1, kb1, k2, kb2 = jax.random.split(key, 5)
    x = jax.random.normal(kx, (B, expand_c, H, W), dtype=jnp.float32)
    w_reduce = 0.2 * jax.random.normal(k1, (squeeze_c, expand_c), dtype=jnp.float32)
    b_reduce = 0.1 * jax.random.normal(kb1, (squeeze_c,), dtype=jnp.float32)
    w_expand = 0.2 * jax.random.normal(k2, (expand_c, squeeze_c), dtype=jnp.float32)
    b_expand = 0.1 * jax.random.normal(kb2, (expand_c,), dtype=jnp.float32)

    y = se_pallas(x, w_reduce, b_reduce, w_expand, b_expand)
    y = jax.block_until_ready(y)

    y_ref = se_reference(x, w_reduce, b_reduce, w_expand, b_expand)
    assert y.shape == x.shape
    # Tolerance accounts for the EUP approximate-reciprocal sigmoid.
    assert bool(jnp.allclose(y, y_ref, rtol=5e-3, atol=5e-3)), "mismatch vs reference"

    print("KERNEL_OK")
</pallas_src>

<mosaic_0001>
module attributes {stable_mosaic.version = 11 : i64} {
  func.func @_se_kernel(%arg0: i32, %arg1: memref<1x32x256xf32, #tpu.memory_space<vmem>>, %arg2: memref<32x8xf32, #tpu.memory_space<vmem>>, %arg3: memref<1x8xf32, #tpu.memory_space<vmem>>, %arg4: memref<8x32xf32, #tpu.memory_space<vmem>>, %arg5: memref<1x32xf32, #tpu.memory_space<vmem>>, %arg6: memref<1x32x256xf32, #tpu.memory_space<vmem>>) attributes {dimension_semantics = [#tpu.dimension_semantics<parallel>], iteration_bounds = array<i64: 2>, scalar_prefetch = 0 : i64, scratch_operands = 0 : i64, tpu.core_type = #tpu.core_type<tc>, window_params = [{transform_indices = @transform_0, window_bounds = array<i64: 1, 32, 256>}, {pipeline_mode = #tpu.pipeline_mode<synchronous>, transform_indices = @transform_1, window_bounds = array<i64: 32, 8>}, {pipeline_mode = #tpu.pipeline_mode<synchronous>, transform_indices = @transform_2, window_bounds = array<i64: 1, 8>}, {pipeline_mode = #tpu.pipeline_mode<synchronous>, transform_indices = @transform_3, window_bounds = array<i64: 8, 32>}, {pipeline_mode = #tpu.pipeline_mode<synchronous>, transform_indices = @transform_4, window_bounds = array<i64: 1, 32>}, {transform_indices = @transform_5, window_bounds = array<i64: 1, 32, 256>}]} {
    %c0 = arith.constant 0 : index
    %c0_0 = arith.constant 0 : index
    %c0_1 = arith.constant 0 : index
    %0 = vector.load %arg1[%c0, %c0_0, %c0_1] : memref<1x32x256xf32, #tpu.memory_space<vmem>>, vector<1x32x256xf32>
    %cst = arith.constant dense<0.000000e+00> : vector<1x32xf32>
    %1 = vector.multi_reduction <add>, %0, %cst [2] : vector<1x32x256xf32> to vector<1x32xf32>
    %cst_2 = arith.constant 3.906250e-03 : f32
    %2 = vector.broadcast %cst_2 : f32 to vector<1x32xf32>
    %3 = arith.mulf %1, %2 : vector<1x32xf32>
    %c0_3 = arith.constant 0 : index
    %c0_4 = arith.constant 0 : index
    %4 = vector.load %arg2[%c0_3, %c0_4] : memref<32x8xf32, #tpu.memory_space<vmem>>, vector<32x8xf32>
    %cst_5 = arith.constant dense<0.000000e+00> : vector<1x8xf32>
    %5 = tpu.matmul %3, %4, %cst_5 {dimension_numbers = #tpu.dot_dimension_numbers<[1], [0], [0], [1], [0, 0, 1, 1], [], []>} : vector<1x32xf32>, vector<32x8xf32>, vector<1x8xf32> -> vector<1x8xf32>
    %c0_6 = arith.constant 0 : index
    %c0_7 = arith.constant 0 : index
    %6 = vector.load %arg3[%c0_6, %c0_7] : memref<1x8xf32, #tpu.memory_space<vmem>>, vector<1x8xf32>
    %7 = arith.addf %5, %6 : vector<1x8xf32>
    %cst_8 = arith.constant 0.000000e+00 : f32
    %8 = vector.broadcast %cst_8 : f32 to vector<1x8xf32>
    %9 = arith.subf %8, %7 : vector<1x8xf32>
    %10 = math.exp %9 : vector<1x8xf32>
    %cst_9 = arith.constant 1.000000e+00 : f32
    %11 = vector.broadcast %cst_9 : f32 to vector<1x8xf32>
    %12 = arith.addf %11, %10 : vector<1x8xf32>
    %13 = tpu.reciprocal %12 {approx = true} : vector<1x8xf32> -> vector<1x8xf32>
    %14 = arith.mulf %7, %13 : vector<1x8xf32>
    %c0_10 = arith.constant 0 : index
    %c0_11 = arith.constant 0 : index
    %15 = vector.load %arg4[%c0_10, %c0_11] : memref<8x32xf32, #tpu.memory_space<vmem>>, vector<8x32xf32>
    %cst_12 = arith.constant dense<0.000000e+00> : vector<1x32xf32>
    %16 = tpu.matmul %14, %15, %cst_12 {dimension_numbers = #tpu.dot_dimension_numbers<[1], [0], [0], [1], [0, 0, 1, 1], [], []>} : vector<1x8xf32>, vector<8x32xf32>, vector<1x32xf32> -> vector<1x32xf32>
    %c0_13 = arith.constant 0 : index
    %c0_14 = arith.constant 0 : index
    %17 = vector.load %arg5[%c0_13, %c0_14] : memref<1x32xf32, #tpu.memory_space<vmem>>, vector<1x32xf32>
    %18 = arith.addf %16, %17 : vector<1x32xf32>
    %cst_15 = arith.constant 0.000000e+00 : f32
    %19 = vector.broadcast %cst_15 : f32 to vector<1x32xf32>
    %20 = arith.subf %19, %18 : vector<1x32xf32>
    %21 = math.exp %20 : vector<1x32xf32>
    %cst_16 = arith.constant 1.000000e+00 : f32
    %22 = vector.broadcast %cst_16 : f32 to vector<1x32xf32>
    %23 = arith.addf %22, %21 : vector<1x32xf32>
    %24 = tpu.reciprocal %23 {approx = true} : vector<1x32xf32> -> vector<1x32xf32>
    %25 = vector.shape_cast %24 : vector<1x32xf32> to vector<1x32x1xf32>
    %26 = vector.broadcast %25 : vector<1x32x1xf32> to vector<1x32x256xf32>
    %27 = arith.mulf %0, %26 : vector<1x32x256xf32>
    %c0_17 = arith.constant 0 : index
    %c0_18 = arith.constant 0 : index
    %c0_19 = arith.constant 0 : index
    %28 = vector.load %arg6[%c0_17, %c0_18, %c0_19] : memref<1x32x256xf32, #tpu.memory_space<vmem>>, vector<1x32x256xf32>
    tpu.vector_store %arg6[%c0_17, %c0_18, %c0_19], %27 {strides = array<i32>} : memref<1x32x256xf32, #tpu.memory_space<vmem>>, vector<1x32x256xf32>,
    return
  }
  func.func @transform_0(%arg0: i32) -> (i32, i32, i32) {
    %c0_i32 = arith.constant 0 : i32
    %c0_i32_0 = arith.constant 0 : i32
    %c0_i32_1 = arith.constant 0 : i32
    return %arg0, %c0_i32, %c0_i32_0 : i32, i32, i32
  }
  func.func @transform_1(%arg0: i32) -> (i32, i32) {
    %c0_i32 = arith.constant 0 : i32
    %c0_i32_0 = arith.constant 0 : i32
    %c0_i32_1 = arith.constant 0 : i32
    return %c0_i32, %c0_i32_0 : i32, i32
  }
  func.func @transform_2(%arg0: i32) -> (i32, i32) {
    %c0_i32 = arith.constant 0 : i32
    %c0_i32_0 = arith.constant 0 : i32
    %c0_i32_1 = arith.constant 0 : i32
    return %c0_i32, %c0_i32_0 : i32, i32
  }
  func.func @transform_3(%arg0: i32) -> (i32, i32) {
    %c0_i32 = arith.constant 0 : i32
    %c0_i32_0 = arith.constant 0 : i32
    %c0_i32_1 = arith.constant 0 : i32
    return %c0_i32, %c0_i32_0 : i32, i32
  }
  func.func @transform_4(%arg0: i32) -> (i32, i32) {
    %c0_i32 = arith.constant 0 : i32
    %c0_i32_0 = arith.constant 0 : i32
    %c0_i32_1 = arith.constant 0 : i32
    return %c0_i32, %c0_i32_0 : i32, i32
  }
  func.func @transform_5(%arg0: i32) -> (i32, i32, i32) {
    %c0_i32 = arith.constant 0 : i32
    %c0_i32_0 = arith.constant 0 : i32
    %c0_i32_1 = arith.constant 0 : i32
    return %arg0, %c0_i32, %c0_i32_0 : i32, i32, i32
  }
}

</mosaic_0001>

<bundles_post_ra>
// kernel: tpu_custom_call.1
= control target key start
LH: loop header
LB: loop body
LE: loop exit
PB: predicated region body
PF: predicated region fallthrough
CT: control target
= control target key end

     0   :  { %10 = vsyncpa [#allocation3], 0  ;;  %s1049_s0 = inlined_call_operand.hbm [shape: f32[2,32,256], index: 0, kind: input, shape index: {}]   ;;  %s1050_s1 = inlined_call_operand.vmem [shape: f32[32,8], index: 1, kind: input, shape index: {}]   ;;  %s1051_s2 = inlined_call_operand.vmem [shape: f32[1,8], index: 2, kind: input, shape index: {}]   ;;  %s1052_s3 = inlined_call_operand.vmem [shape: f32[8,32], index: 3, kind: input, shape index: {}]   ;;  %s1053_s4 = inlined_call_operand.vmem [shape: f32[1,32], index: 4, kind: input, shape index: {}]   ;;  %s1054_s5 = inlined_call_operand.hbm [shape: f32[2,32,256], index: 5, kind: output, shape index: {}]  }
   0x1   :  { %12 = vsyncpa [#allocation3 + $0x1], 0 }
   0x2   :  { %13 = vsyncpa [#allocation4], 0 }
   0x3   :  { %15 = vsyncpa [#allocation4 + $0x1], 0  ;;  %s830_s18 = smov 0   ;;  %s832_s19 = smov 0  }
   0x4   :  { %s834_s20 = smov 0   ;;  %s836_s21 = smov 0  }
   0x5 LB: > { %s851_s22 = sadd.s32 4294967295, %s789_s21   ;;  %s585_s23 = sadd.s32 4294967294, %s789_s21   ;;  %s789_s21 = sphi %s836_s21, %s1067_s21   ;;  %s785_s20 = sphi %s834_s20, %s1066_s20   ;;  %s781_s19 = sphi %s832_s19, %s1065_s19   ;;  %s777_s18 = sphi %s830_s18, %s1064_s18  }
   0x6   : > { %s855_s24 = sadd.s32 1, %s789_s21   ;;  %s28_s25 = sadd.s32 1, %s785_s20 }
   0x7   : > { %s25_s26 = ssub.s32 %s789_s21, %s855_s24  ;;  %p35_p0 = scmp.ne.s32.totalorder %s785_s20, %s781_s19 }
   0x8   : > { %p26_p1 = scmp.eq.s32.totalorder %s25_s26, 0  ;;  %p36_p2 = scmp.eq.s32.totalorder %s789_s21, 0 }
   0x9   : > { %p41_p3 = scmp.ne.s32.totalorder %s781_s19, %s777_s18  ;;  %p42_p4 = scmp.eq.s32.totalorder %s851_s22, 0 }
   0xa   : > { %s867_s27 = scalar_select %p26_p1, %s785_s20, %s28_s25  }
   0xb   : > { %p869_p5 = por %p36_p2, %p35_p0  ;;  %p873_p6 = por %p42_p4, %p41_p3 }
   0xc   : > { %p149_p7 = scmp.eq.s32.totalorder %s851_s22, 1  ;;  %p155_p8 = scmp.eq.s32.totalorder %s585_s23, 1 }
   0xd   : > { %p644_p10 = scmp.lt.s32.totalorder %s789_s21, 2  ;;  %s187_s7 = sand.u32 1, %s785_s20  }
   0xe   : > { %p880_p11 = por %p149_p7, %p35_p0  ;;  %p884_p12 = por %p155_p8, %p41_p3 }
   0xf   : > { %s601_s8 = sshll.u32 %s789_s21, 10  ;;  %s588_s9 = sshll.u32 %s187_s7, 6 }
  0x10   : > { %s1058_s30 = scalar_select %p880_p11, 1, 0 }
  0x11   : > { %s1059_s6 = scalar_select %p884_p12, 1, 0 }
  0x12   : > { %s893_s12 = scalar_lea.hbm %s1049_s0, %s601_s8  ;;  %s191_s13 = scalar_lea.vmem [#allocation2], %s588_s9 }
  0x13   : > { %s198_s14 = sshll.u32 %s191_s13, 4  ;;  %p897_p13 = pnand %p644_p10, %p869_p5  ;;  %s901_s14 = int_to_ptr.vmem [resolvable:$true] %s198_s14 }
  0x14   : > { %s903_s16 = scalar_lea.sflag [#allocation3], %s187_s7  ;;  %s693_s17 = scalar_lea.hbm %s893_s12, 1024 }
  0x15   : > { %p694_p0 = scmp.ne.s32.totalorder %s893_s12, %s693_s17  ;;  %p695_p1 = pneg %p897_p13 }
  0x16   : > { %s698_s26 = scalar_lea.hbm %s1049_s0, 2048  ;;  %p699_p4 = scmp.lt.u32.totalorder %s893_s12, %s1049_s0 }
  0x17   : > { %p696_p2 = pnand %p695_p1, %p694_p0  ;;  %p700_p5 = scmp.lt.u32.totalorder %s698_s26, %s693_s17 }
  0x18   : > { %p702_p8 = scmp.lt.u32.totalorder %s693_s17, %s893_s12 }
  0x19   : > { %p697_p3 = pneg %p696_p2  ;;  %p701_p7 = por %p700_p5, %p699_p4 }
  0x1b   : > { %p703_p10 = por %p702_p8, %p701_p7 }
  0x1d   : > { %p704_p9 = pnand %p703_p10, %p697_p3 }
  0x1f   : > { %707 = shalt.err (!%p704_p9)
}
  0x20   : > { %s708_s7 = scalar_lea.vmem %s901_s14, 1024  ;;  %s791_s9 = smov [#allocation2]  }
  0x21   : > { %p709_p0 = scmp.ne.s32.totalorder %s901_s14, %s708_s7  ;;  %s713_s10 = sshll.u32 %s791_s9, 4  ;;  %s714_s10 = int_to_ptr.vmem [resolvable:$false] %s713_s10 }
  0x22   : > { %s715_s11 = scalar_lea.vmem %s714_s10, 2048  ;;  %p716_p11 = scmp.lt.s32.totalorder %s901_s14, %s714_s10 }
  0x23   : > { %p711_p2 = pnand %p709_p0, %p695_p1  ;;  %p717_p4 = scmp.lt.s32.totalorder %s715_s11, %s708_s7 }
  0x25   : > { %p712_p12 = pneg %p711_p2  ;;  %p718_p5 = por %p717_p4, %p716_p11 }
  0x27   : > { %p719_p7 = pnand %p718_p5, %p712_p12 }
  0x29   : > { %722 = shalt.err (!%p719_p7)
}
  0x2a   : > { %s792_s13 = smov 256   ;;  %s793_s17 = smov 16  }
  0x2b   : > { %639 = dma.hbm_to_vmem [thread:$0]  (!%p897_p13), %s893_s12, 1024, %s901_s14, %s903_s16, %s792_s13, %s792_s13, %s793_s17  }
  0x2c   : > { %p591_p9 = scmp.ge.s32.totalorder %s789_s21, 1  ;;  %p206_p1 = scmp.lt.s32.totalorder %s789_s21, 3 }
  0x2e   : > { %p207_p3 = pnand %p591_p9, %p206_p1 }
  0x2f   : > { %s934_s23 = sand.u32 (!%p207_p3), 1, %s781_s19  }
  0x30   : > { %210 = sbr.rel (%p207_p3) target bundleno = 840 (0x348), region = 40  ;;  %s592_s25 = sshll.u32 (!%p207_p3), %s934_s23, 6 }
  0x31   : > { %s213_s26 = scalar_lea.sflag (!%p207_p3), [#allocation3], %s934_s23  ;;  %s216_s28 = scalar_lea.vmem (!%p207_p3), [#allocation2], %s592_s25 }
  0x37   : > { %768 = dma.done.wait (%p873_p6), %s213_s26, 1024  }
  0x38   : > { %770 = vsyncadd (%p873_p6), %s213_s26, 4294966272  ;;  %v944_v0 = vld [vmem:[%s216_s28] sm:$0xff]  ;;  %v946_v1 = vld [vmem:[%s216_s28 + $0x8] sm:$0xff]  ;;  %v794_v15 = vmov 0.0|0.0   ;;  %vm795_vm0 = vmmov 0   ;;  %v796_v19 = vmov 0.0   ;;  %v276_v20 = vlaneseq }
  0x39   : > { %v948_v2 = vld [vmem:[%s216_s28 + $0x20] sm:$0xff]  ;;  %v251_v3 = vadd.f32 %v946_v1, %v944_v0  ;;  %v952_v4 = vld [vmem:[%s216_s28 + $0x28] sm:$0xff]  ;;  %v954_v5 = vld [vmem:[%s216_s28 + $0x10] sm:$0xff]  ;;  %626 = vmatprep.subr.bf16.mxu0 %v794_v15  ;;  %618 = vmatprep.mubr.msk.f32.mxu0 %vm795_vm0, %v796_v19  ;;  %vm287_vm1 = vcmask 130112   ;;  %vm294_vm2 = vcmask 195712   ;;  %vm301_vm3 = vcmask 261312  }
  0x3a   : > { %v956_v6 = vld [vmem:[%s216_s28 + $0x18] sm:$0xff]  ;;  %v257_v7 = vadd.f32 %v952_v4, %v948_v2  ;;  %v960_v8 = vld [vmem:[%s216_s28 + $0x30] sm:$0xff]  ;;  %v267_v12 = vld [vmem:[%s1050_s1] sm:$0xff]  ;;  %621 = vmatprep.subr.mxu1 %v796_v19  ;;  %623 = vmatprep.mubr.msk.f32.mxu1 %vm795_vm0, %v796_v19  ;;  %v277_v21 = vand.u32 127, %v276_v20  ;;  %v279_v22 = vshrl.u32 %v276_v20, 7  ;;  %vm303_vm4 = vcmask 261120  }
  0x3b   : > { %v962_v9 = vld [vmem:[%s216_s28 + $0x38] sm:$0xff]  ;;  %252 = vadd.xlane.f32.xlu0 %v251_v3  ;;  %v254_v10 = vadd.f32 %v956_v6, %v954_v5  ;;  %v268_v13 = vld [vmem:[%s1050_s1 + $0x8] sm:$0xff]  ;;  %v269_v16 = vld [vmem:[%s1050_s1 + $0x10] sm:$0xff]  ;;  %vm384_vm5 = vcmask 64512   ;;  %s242_s29 = scalar_lea.vmem [#allocation5], %s592_s25  ;;  %s602_s14 = sshll.u32 %s851_s22, 10 }
  0x3c   : > { %258 = vadd.xlane.f32.xlu1 %v257_v7  ;;  %v260_v11 = vadd.f32 %v962_v9, %v960_v8  ;;  %v627_v14 = vpack.c.bf16 %v268_v13, %v267_v12  ;;  %v270_v17 = vld [vmem:[%s1050_s1 + $0x18] sm:$0xff]  ;;  %v282_v23 = vadd.s32 4294967288, %v277_v21  ;;  %v289_v25 = vadd.s32 4294967280, %v277_v21  ;;  %v382_v45 = vld [vmem:[%s1052_s3] sm:$0xff]  ;;  %s512_s12 = sshll.u32 %s242_s29, 4  ;;  %s1003_s16 = scalar_lea.hbm %s1054_s5, %s602_s14  ;;  %s998_s12 = int_to_ptr.vmem [resolvable:$true] %s512_s12 }
  0x3d   : > { %v630_v18 = vpack.c.bf16 %v270_v17, %v269_v16  ;;  %v296_v26 = vadd.s32 4294967272, %v277_v21  ;;  %v280_v28 = vsub.s32 %v277_v21, %v279_v22  ;;  %622 = vmatpush3.msra.mxu1 %v382_v45  ;;  %v271_v46 = vld [vmem:[%s1051_s2] sm:$0x1]  ;;  %v465_v3 = vsub.s32 0, %v279_v22  ;;  %s499_s22 = scalar_lea.sflag [#allocation4], %s934_s23  ;;  %s723_s8 = scalar_lea.vmem %s998_s12, 1024 }
  0x3e   : > { %628 = vmatpush3.bf16.msra.mxu0 %v627_v14  ;;  %v285_v30 = vsub.s32 %v282_v23, %v279_v22  ;;  %v292_v31 = vsub.s32 %v289_v25, %v279_v22  ;;  %v383_v56 = vld [vmem:[%s1053_s4] sm:$0x1]  ;;  %p724_p6 = scmp.ne.s32.totalorder %s998_s12, %s723_s8  ;;  %p1061_p11 = scmp.ne.s32.totalorder %s1058_s30, 0 }
  0x3f   : > { %255 = vadd.xlane.f32.xlu0 %v254_v10  ;;  %629 = vmatprep.subr.bf16.mxu0 %v794_v15  ;;  %v299_v34 = vsub.s32 %v296_v26, %v279_v22  ;;  %s797_s7 = smov [#allocation5]  }
  0x40   : > { %261 = vadd.xlane.f32.xlu1 %v260_v11  ;;  %p725_p12 = pnand %p724_p6, %p1061_p11  ;;  %s727_s9 = sshll.u32 %s797_s7, 4  ;;  %s728_s9 = int_to_ptr.vmem [resolvable:$false] %s727_s9 }
  0x41   : > { %s729_s10 = scalar_lea.vmem %s728_s9, 2048  ;;  %p730_p8 = scmp.lt.s32.totalorder %s998_s12, %s728_s9 }
  0x42   : > { %631 = vmatpush3.bf16.msra.mxu0 %v630_v18  ;;  %p726_p13 = pneg %p725_p12  ;;  %p731_p10 = scmp.lt.s32.totalorder %s729_s10, %s723_s8 }
  0x44   : > { %p732_p0 = por %p731_p10, %p730_p8 }
  0x46   : > { %p733_p2 = pnand %p732_p0, %p726_p13 }
  0xc8   : > { %v253_v24 = vpop.xlane.xlu0 %252 }
  0xc9   : > { %v259_v27 = vpop.xlane.xlu1 %258  ;;  %v263_v29 = vmul.f32 0.00390625, %v253_v24 }
  0xca   : > { %v265_v32 = vmul.f32 0.00390625, %v259_v27 }
  0xcb   : > { %v281_v38 = vrot.slane %v263_v29, %v280_v28 }
  0xcc   : > { %v256_v33 = vpop.xlane.xlu0 %255  ;;  %v293_v40 = vrot.slane %v265_v32, %v292_v31 }
  0xcd   : > { %v264_v35 = vmul.f32 0.00390625, %v256_v33  ;;  %v262_v36 = vpop.xlane.xlu1 %261 }
  0xce   : > { %v266_v37 = vmul.f32 0.00390625, %v262_v36 }
  0xcf   : > { %v286_v39 = vrot.slane %v264_v35, %v285_v30 }
  0xd0   : > { %v300_v41 = vrot.slane %v266_v37, %v299_v34 }
  0xd1   : > { %v288_v42 = vsel %vm287_vm1, %v286_v39, %v281_v38 }
  0xd2   : > { %v295_v43 = vsel %vm294_vm2, %v293_v40, %v288_v42 }
  0xd3   : > { %v302_v44 = vsel %vm301_vm3, %v300_v41, %v295_v43 }
  0xd4   : > { %619 = vmatmul.mubr.msk.f32.vlgmr.msra.gmra.mrb[0].mxu0 %vm303_vm4, %v302_v44 }
 0x1a7   : > { %v372_v47 = vpop.f32.mrb[0].mxu0 }
 0x1a8   : > { %v373_v48 = vadd.f32 %v372_v47, %v271_v46  ;;  %v620_v49 = vpop.f32.mrb[1].mxu0 }
 0x1aa   : > { %v376_v50 = vsub.f32 0.0, %v373_v48 }
 0x1ac   : > { %v377_v51 = vmul.f32 1.442695, %v376_v50 }
 0x1ae   : > { %685 = vpow2.f32 %v377_v51 }
 0x1b8   : > { %v686_v52 = vpop.eup %685 }
 0x1b9   : > { %v379_v53 = vadd.f32 1.0, %v686_v52 }
 0x1bb   : > { %687 = vrcp.f32 %v379_v53 }
 0x1c5   : > { %v688_v54 = vpop.eup %687 }
 0x1c6   : > { %v381_v55 = vmul.f32 %v688_v54, %v373_v48 }
 0x1c8   : > { %624 = vmatmul.mubr.msk.f32.vlgmr.msra.gmra.mrb[0].mxu1 %vm384_vm5, %v381_v55 }
 0x29b   : > { %v454_v57 = vpop.f32.mrb[0].mxu1 }
 0x29c   : > { %v455_v58 = vadd.f32 %v454_v57, %v383_v56  ;;  %v625_v59 = vpop.f32.mrb[1].mxu1 }
 0x29e   : > { %v458_v60 = vsub.f32 0.0, %v455_v58 }
 0x2a0   : > { %v459_v61 = vmul.f32 1.442695, %v458_v60 }
 0x2a2   : > { %689 = vpow2.f32 %v459_v61 }
 0x2ac   : > { %v690_v62 = vpop.eup %689 }
 0x2ad   : > { %v461_v63 = vadd.f32 1.0, %v690_v62 }
 0x2af   : > { %691 = vrcp.f32 %v461_v63 }
 0x2b9   : > { %v692_v7 = vpop.eup %691 }
 0x2ba   : > { %v466_v10 = vrot.slane %v692_v7, %v465_v3 }
 0x2bc   : > { %472 = vbcast.lane.b32.xlu1 %v466_v10, 264  ;;  %468 = vbcast.lane.b32.xlu0 %v466_v10, 256 }
 0x2c0   : > { %476 = vbcast.lane.b32.xlu1 %v466_v10, 272 }
 0x2c4   : > { %480 = vbcast.lane.b32.xlu1 %v466_v10, 280 }
 0x32e   : > { %v473_v11 = vpop.permute.xlu1 %472  ;;  %v469_v12 = vpop.permute.xlu0 %468 }
 0x32f   : > { %v484_v13 = vmul.f32 %v473_v11, %v954_v5  ;;  %v485_v14 = vmul.f32 %v473_v11, %v956_v6  ;;  %v482_v15 = vmul.f32 %v469_v12, %v944_v0  ;;  %v483_v16 = vmul.f32 %v469_v12, %v946_v1 }
 0x331   : > { %492 = vst [vmem:[%s242_s29 + $0x10] sm:$0xff] %v484_v13  ;;  %493 = vst [vmem:[%s242_s29 + $0x18] sm:$0xff] %v485_v14 }
 0x332   : > { %490 = vst [vmem:[%s242_s29] sm:$0xff] %v482_v15  ;;  %491 = vst [vmem:[%s242_s29 + $0x8] sm:$0xff] %v483_v16  ;;  %v477_v17 = vpop.permute.xlu1 %476 }
 0x333   : > { %v486_v18 = vmul.f32 %v477_v17, %v948_v2  ;;  %v487_v5 = vmul.f32 %v477_v17, %v952_v4 }
 0x335   : > { %494 = vst [vmem:[%s242_s29 + $0x20] sm:$0xff] %v486_v18  ;;  %495 = vst [vmem:[%s242_s29 + $0x28] sm:$0xff] %v487_v5 }
 0x336   : > { %v481_v0 = vpop.permute.xlu1 %480 }
 0x337   : > { %v488_v1 = vmul.f32 %v481_v0, %v960_v8  ;;  %v489_v2 = vmul.f32 %v481_v0, %v962_v9 }
 0x339   : > { %496 = vst [vmem:[%s242_s29 + $0x30] sm:$0xff] %v488_v1  ;;  %497 = vst [vmem:[%s242_s29 + $0x38] sm:$0xff] %v489_v2 }
 0x33a   : > { %736 = shalt.err (!%p733_p2)
}
 0x33b   : > { %s737_s11 = scalar_lea.hbm %s1003_s16, 1024  ;;  %s741_s26 = scalar_lea.hbm %s1054_s5, 2048 }
 0x33c   : > { %p738_p4 = scmp.ne.s32.totalorder %s1003_s16, %s737_s11  ;;  %p742_p9 = scmp.lt.u32.totalorder %s1003_s16, %s1054_s5 }
 0x33d   : > { %p743_p1 = scmp.lt.u32.totalorder %s741_s26, %s737_s11  ;;  %p745_p6 = scmp.lt.u32.totalorder %s737_s11, %s1003_s16 }
 0x33e   : > { %p739_p5 = pnand %p738_p4, %p1061_p11 }
 0x33f   : > { %p744_p3 = por %p743_p1, %p742_p9 }
 0x340   : > { %p740_p7 = pneg %p739_p5 }
 0x341   : > { %p746_p12 = por %p745_p6, %p744_p3 }
 0x343   : > { %p747_p13 = pnand %p746_p12, %p740_p7 }
 0x345   : > { %750 = shalt.err (!%p747_p13)
}
 0x346   : > { %s798_s14 = smov 256   ;;  %s799_s25 = smov 16  }
 0x347   : > { %634 = dma.vmem_to_hbm [thread:$0]  (%p1061_p11), %s998_s12, 1024, %s1003_s16, %s499_s22, %s798_s14, %s798_s14, %s799_s25  }
 0x348 PF: > { %s527_s15 = sand.u32 1, %s777_s18   ;;  %p1062_p8 = scmp.ne.s32.totalorder %s1059_s6, 0 }
 0x349   : > { %p1063_p10 = scmp.ge.s32.totalorder %s789_s21, 2  ;;  %s528_s8 = scalar_lea.sflag [#allocation4], %s527_s15 }
 0x34b   : > { %p641_p0 = pnand %p1063_p10, %p1062_p8 }
 0x34d   : > { %772 = dma.done.wait (!%p641_p0), %s528_s8, 1024  }
 0x34e   : > { %774 = vsyncadd (!%p641_p0), %s528_s8, 4294966272  ;;  %p18_p2 = scmp.ge.s32.totalorder %s855_s24, 4   ;;  %s1064_s18 = smov %s781_s19 }
 0x34f   : > { %s1065_s19 = smov %s785_s20  ;;  %s1066_s20 = smov %s867_s27 }
 0x350   : > { %s1067_s21 = smov %s855_s24  ;;  %20 = sbr.rel (!%p18_p2) target bundleno = 5 (0x5), region = 85 }
 0x357   :  { %533 = vsyncpa [#allocation3], 1 }
 0x358   :  { %535 = vsyncpa [#allocation3 + $0x1], 1 }
 0x359   :  { %536 = vsyncpa [#allocation4], 1 }
 0x35a   :  { %538 = vsyncpa [#allocation4 + $0x1], 1 }

</bundles_post_ra>
